<compile_context>
chip_gen: v7x
topology: tpu7x:2x2x1
jax: 0.10.0
libtpu: 0.0.40
codegen_flags: <defaults>
</compile_context>

<pallas_src>
from functools import partial

import jax
import jax.numpy as jnp
from jax import lax
from jax.experimental import pallas as pl
from jax.experimental.pallas import tpu as pltpu

# ---- WordleEncoder constants ------------------------------------------------
NUM_LETTERS = 26
NUM_STATES = 4
SEQ_LEN = 5
VOCAB_SIZE = 26

# ---- model hyperparameters (defaults from the PyTorch module) ---------------
LETTER_EMB_DIM = 8
STATE_EMB_DIM = 4
HIDDEN_DIM = 64
IN_PER_POS = LETTER_EMB_DIM + STATE_EMB_DIM            # 12
FEAT_DIM = IN_PER_POS * SEQ_LEN                        # 60
OUT_DIM = VOCAB_SIZE * SEQ_LEN                         # 130
OUT_PAD = 256                                          # lane/MXU-aligned output

# ---- fused one-hot layout ----------------------------------------------------
LETTER_SLOTS = NUM_LETTERS + 1                         # 27 letter slots / position
PER_POS = 32                                           # 27 + 4 states + 1 zero pad
ONEHOT_DIM = PER_POS * SEQ_LEN                         # 160 (folded fc1 input dim)
NUM_TARGETS = 2 * SEQ_LEN                              # 10 hot columns per row


def _fused_kernel(t_ref, w1_ref, b1_ref, w2_ref, b2_ref, o_ref):
    """one_hot(target cols) @ W1eff + b1 -> ReLU -> @ W2pad + b2pad, in VMEM."""
    tb = t_ref.shape[0]
    t = t_ref[...]                                      # (tb, 10) int32 hot columns

    # Build the (tb, 160) one-hot activation with iota + compares (VPU only).
    col = lax.broadcasted_iota(jnp.int32, (tb, ONEHOT_DIM), 1)
    hit = col < 0                                       # all-False bool
    for j in range(NUM_TARGETS):                        # static unroll (10)
        hit = jnp.logical_or(hit, col == t[:, j:j + 1])
    x = hit.astype(w1_ref.dtype)                        # bf16 (or f32) MXU operand

    h = jnp.dot(x, w1_ref[...], preferred_element_type=jnp.float32) + b1_ref[...]
    h = jnp.maximum(h, 0.0).astype(w2_ref.dtype)        # ReLU, cast for 2nd matmul
    o = jnp.dot(h, w2_ref[...], preferred_element_type=jnp.float32) + b2_ref[...]
    o_ref[...] = o                                      # (tb, 256), lane-dense store


def _choose_block(B, block_b):
    """Batch tile: big (overhead amortization) but nb >= 2 for v7x megacore."""
    block_b = max(8, min(int(block_b), 4096))           # v7x 64MiB-VMEM safety cap
    block_b = (block_b // 8) * 8
    if B <= 16:
        return B                                        # single full-batch block
    half = ((-(-B // 2)) + 7) // 8 * 8                  # cdiv(B,2) rounded up to 8
    return min(block_b, half)


def wordle_mlp_pallas(targets, w1eff, b1, w2p, b2p, *, block_b=2048):
    B, nt = targets.shape
    tb = _choose_block(B, block_b)
    nb = pl.cdiv(B, tb)

    flops = 2 * B * (ONEHOT_DIM * HIDDEN_DIM + HIDDEN_DIM * OUT_PAD)
    bytes_accessed = (targets.size * 4
                      + w1eff.size * w1eff.dtype.itemsize + b1.size * 4
                      + w2p.size * w2p.dtype.itemsize + b2p.size * 4
                      + B * OUT_PAD * 4)

    return pl.pallas_call(
        _fused_kernel,
        out_shape=jax.ShapeDtypeStruct((B, OUT_PAD), jnp.float32),
        grid_spec=pltpu.PrefetchScalarGridSpec(
            num_scalar_prefetch=0,
            grid=(nb,),
            in_specs=[
                pl.BlockSpec((tb, nt), lambda i: (i, 0)),                  # targets
                pl.BlockSpec((ONEHOT_DIM, HIDDEN_DIM), lambda i: (0, 0)),  # W1eff
                pl.BlockSpec((1, HIDDEN_DIM), lambda i: (0, 0)),           # b1
                pl.BlockSpec((HIDDEN_DIM, OUT_PAD), lambda i: (0, 0)),     # W2 (pad)
                pl.BlockSpec((1, OUT_PAD), lambda i: (0, 0)),              # b2 (pad)
            ],
            out_specs=pl.BlockSpec((tb, OUT_PAD), lambda i: (i, 0)),
        ),
        compiler_params=pltpu.CompilerParams(
            dimension_semantics=("parallel",)),
        cost_estimate=pl.CostEstimate(
            flops=flops, transcendentals=0, bytes_accessed=bytes_accessed),
    )(targets, w1eff, b1, w2p, b2p)


def init_params(key):
    """Deterministic parameter init (shapes mirror the PyTorch module)."""
    ks = jax.random.split(key, 6)
    letter_emb = jax.random.normal(ks[0], (NUM_LETTERS + 1, LETTER_EMB_DIM),
                                   jnp.float32)
    state_emb = jax.random.normal(ks[1], (NUM_STATES, STATE_EMB_DIM),
                                  jnp.float32)
    # fc1 weight stored as (in, out) so the kernel computes x @ W.
    lim1 = 1.0 / jnp.sqrt(FEAT_DIM)
    w1 = jax.random.uniform(ks[2], (FEAT_DIM, HIDDEN_DIM), jnp.float32,
                            -lim1, lim1)
    b1 = jax.random.uniform(ks[3], (1, HIDDEN_DIM), jnp.float32, -lim1, lim1)
    lim2 = 1.0 / jnp.sqrt(HIDDEN_DIM)
    w2 = jax.random.uniform(ks[4], (HIDDEN_DIM, OUT_DIM), jnp.float32,
                            -lim2, lim2)
    b2 = jax.random.uniform(ks[5], (1, OUT_DIM), jnp.float32, -lim2, lim2)
    return dict(letter_emb=letter_emb, state_emb=state_emb,
                w1=w1, b1=b1, w2=w2, b2=b2)


def fold_params(params, *, use_bf16=True):
    """Fold embeddings into fc1 (one-hot(160) @ W1eff == emb-gather @ W1) and
    pad fc_out's N dim to 256 lanes.  Matmul weights optionally cast to bf16
    (f32 accumulation stays in the kernel); biases stay f32."""
    w1 = params["w1"]                                   # (60, 64)
    blocks = []
    pad_rows = PER_POS - LETTER_SLOTS - NUM_STATES      # 1 zero-padded slot
    for p in range(SEQ_LEN):
        wl = w1[p * IN_PER_POS: p * IN_PER_POS + LETTER_EMB_DIM, :]        # (8, H)
        ws = w1[p * IN_PER_POS + LETTER_EMB_DIM: (p + 1) * IN_PER_POS, :]  # (4, H)
        blocks.append(jnp.concatenate([
            params["letter_emb"] @ wl,                  # (27, H)
            params["state_emb"] @ ws,                   # (4, H)
            jnp.zeros((pad_rows, HIDDEN_DIM), jnp.float32),
        ], axis=0))
    w1eff = jnp.concatenate(blocks, axis=0)             # (160, 64)

    w2p = jnp.zeros((HIDDEN_DIM, OUT_PAD), jnp.float32)
    w2p = w2p.at[:, :OUT_DIM].set(params["w2"])         # (64, 256)
    b2p = jnp.zeros((1, OUT_PAD), jnp.float32)
    b2p = b2p.at[:, :OUT_DIM].set(params["b2"])         # (1, 256)

    mm_dtype = jnp.bfloat16 if use_bf16 else jnp.float32
    return dict(w1eff=w1eff.astype(mm_dtype), b1=params["b1"],
                w2p=w2p.astype(mm_dtype), b2p=b2p)


# Per-position one-hot column offsets (computed in the wrapper, not per step).
_LETTER_OFF = jnp.arange(SEQ_LEN, dtype=jnp.int32) * PER_POS           # 0,32,...
_STATE_OFF = _LETTER_OFF + LETTER_SLOTS                                # 27,59,...


@partial(jax.jit, static_argnames=("block_b",))
def wordle_guesser_forward(folded, letter_idxs, state_idxs, block_b=2048):
    """Full forward pass matching WordleGuesserModel.forward semantics."""
    B = letter_idxs.shape[0]
    li = letter_idxs.astype(jnp.int32)
    si = state_idxs.astype(jnp.int32)
    # Packed hot-column indices: (B, 10) int32 — single small index input.
    targets = jnp.concatenate([li + _LETTER_OFF, si + _STATE_OFF], axis=1)
    out = wordle_mlp_pallas(targets, folded["w1eff"], folded["b1"],
                            folded["w2p"], folded["b2p"],
                            block_b=block_b)            # (B, 256)
    return out[:, :OUT_DIM].reshape(B, SEQ_LEN, VOCAB_SIZE)


def _reference_forward(params, letter_idxs, state_idxs):
    """Pure-JAX f32 reference (unfused, mirrors the PyTorch graph exactly)."""
    B = letter_idxs.shape[0]
    letter_e = jnp.take(params["letter_emb"], letter_idxs, axis=0)
    state_e = jnp.take(params["state_emb"], state_idxs, axis=0)
    x = jnp.concatenate([letter_e, state_e], axis=-1).reshape(B, FEAT_DIM)
    h = jnp.maximum(x @ params["w1"] + params["b1"], 0.0)
    logits = h @ params["w2"] + params["b2"]
    return logits.reshape(B, SEQ_LEN, VOCAB_SIZE)


if __name__ == "__main__":
    key = jax.random.PRNGKey(0)
    pkey, lkey, skey, lkey2, skey2 = jax.random.split(key, 5)

    params = init_params(pkey)
    folded_f32 = fold_params(params, use_bf16=False)    # exact-parity path
    folded_bf16 = fold_params(params, use_bf16=True)    # fast MXU path

    # Small-shape check (single full-batch block).
    B = 8
    letter_idxs = jax.random.randint(lkey, (B, SEQ_LEN), 0, NUM_LETTERS + 1,
                                     dtype=jnp.int32)
    state_idxs = jax.random.randint(skey, (B, SEQ_LEN), 0, NUM_STATES,
                                    dtype=jnp.int32)
    ref = jax.block_until_ready(
        _reference_forward(params, letter_idxs, state_idxs))

    out_f32 = jax.block_until_ready(
        wordle_guesser_forward(folded_f32, letter_idxs, state_idxs))
    assert out_f32.shape == (B, SEQ_LEN, VOCAB_SIZE), out_f32.shape
    assert jnp.allclose(out_f32, ref, atol=1e-4, rtol=1e-4), "mismatch f32 (B=8)"

    out_bf16 = jax.block_until_ready(
        wordle_guesser_forward(folded_bf16, letter_idxs, state_idxs))
    assert jnp.allclose(out_bf16, ref, atol=5e-2, rtol=0.0), "mismatch bf16 (B=8)"

    # Larger batch exercising the grid (2 tiles, parallel/megacore axis).
    B2 = 512
    letter_idxs2 = jax.random.randint(lkey2, (B2, SEQ_LEN), 0, NUM_LETTERS + 1,
                                      dtype=jnp.int32)
    state_idxs2 = jax.random.randint(skey2, (B2, SEQ_LEN), 0, NUM_STATES,
                                     dtype=jnp.int32)
    ref2 = jax.block_until_ready(
        _reference_forward(params, letter_idxs2, state_idxs2))

    out2_f32 = jax.block_until_ready(
        wordle_guesser_forward(folded_f32, letter_idxs2, state_idxs2))
    assert out2_f32.shape == (B2, SEQ_LEN, VOCAB_SIZE)
    assert jnp.allclose(out2_f32, ref2, atol=1e-4, rtol=1e-4), "mismatch f32 (B=512)"

    out2_bf16 = jax.block_until_ready(
        wordle_guesser_forward(folded_bf16, letter_idxs2, state_idxs2))
    assert jnp.allclose(out2_bf16, ref2, atol=5e-2, rtol=0.0), "mismatch bf16 (B=512)"

    print("KERNEL_OK")
</pallas_src>

<mosaic_0001>
module attributes {stable_mosaic.version = 11 : i64} {
  func.func @_fused_kernel(%arg0: i32, %arg1: memref<8x10xi32, #tpu.memory_space<vmem>>, %arg2: memref<160x64xf32, #tpu.memory_space<vmem>>, %arg3: memref<1x64xf32, #tpu.memory_space<vmem>>, %arg4: memref<64x256xf32, #tpu.memory_space<vmem>>, %arg5: memref<1x256xf32, #tpu.memory_space<vmem>>, %arg6: memref<8x256xf32, #tpu.memory_space<vmem>>) attributes {dimension_semantics = [#tpu.dimension_semantics<parallel>], iteration_bounds = array<i64: 1>, scalar_prefetch = 0 : i64, scratch_operands = 0 : i64, tpu.core_type = #tpu.core_type<tc>, window_params = [{transform_indices = @transform_0, window_bounds = array<i64: 8, 10>}, {pipeline_mode = #tpu.pipeline_mode<synchronous>, transform_indices = @transform_1, window_bounds = array<i64: 160, 64>}, {pipeline_mode = #tpu.pipeline_mode<synchronous>, transform_indices = @transform_2, window_bounds = array<i64: 1, 64>}, {pipeline_mode = #tpu.pipeline_mode<synchronous>, transform_indices = @transform_3, window_bounds = array<i64: 64, 256>}, {pipeline_mode = #tpu.pipeline_mode<synchronous>, transform_indices = @transform_4, window_bounds = array<i64: 1, 256>}, {transform_indices = @transform_5, window_bounds = array<i64: 8, 256>}]} {
    %c0 = arith.constant 0 : index
    %c0_0 = arith.constant 0 : index
    %0 = vector.load %arg1[%c0, %c0_0] : memref<8x10xi32, #tpu.memory_space<vmem>>, vector<8x10xi32>
    %1 = tpu.iota {dimensions = array<i32: 1>} : vector<8x160xi32>
    %c0_i32 = arith.constant 0 : i32
    %2 = vector.broadcast %c0_i32 : i32 to vector<8x160xi32>
    %3 = arith.cmpi slt, %1, %2 : vector<8x160xi32>
    %4 = vector.extract_strided_slice %0 {offsets = [0, 0], sizes = [8, 1], strides = [1, 1]} : vector<8x10xi32> to vector<8x1xi32>
    %5 = vector.broadcast %4 : vector<8x1xi32> to vector<8x160xi32>
    %6 = arith.cmpi eq, %1, %5 : vector<8x160xi32>
    %7 = arith.ori %3, %6 : vector<8x160xi1>
    %8 = vector.extract_strided_slice %0 {offsets = [0, 1], sizes = [8, 1], strides = [1, 1]} : vector<8x10xi32> to vector<8x1xi32>
    %9 = vector.broadcast %8 : vector<8x1xi32> to vector<8x160xi32>
    %10 = arith.cmpi eq, %1, %9 : vector<8x160xi32>
    %11 = arith.ori %7, %10 : vector<8x160xi1>
    %12 = vector.extract_strided_slice %0 {offsets = [0, 2], sizes = [8, 1], strides = [1, 1]} : vector<8x10xi32> to vector<8x1xi32>
    %13 = vector.broadcast %12 : vector<8x1xi32> to vector<8x160xi32>
    %14 = arith.cmpi eq, %1, %13 : vector<8x160xi32>
    %15 = arith.ori %11, %14 : vector<8x160xi1>
    %16 = vector.extract_strided_slice %0 {offsets = [0, 3], sizes = [8, 1], strides = [1, 1]} : vector<8x10xi32> to vector<8x1xi32>
    %17 = vector.broadcast %16 : vector<8x1xi32> to vector<8x160xi32>
    %18 = arith.cmpi eq, %1, %17 : vector<8x160xi32>
    %19 = arith.ori %15, %18 : vector<8x160xi1>
    %20 = vector.extract_strided_slice %0 {offsets = [0, 4], sizes = [8, 1], strides = [1, 1]} : vector<8x10xi32> to vector<8x1xi32>
    %21 = vector.broadcast %20 : vector<8x1xi32> to vector<8x160xi32>
    %22 = arith.cmpi eq, %1, %21 : vector<8x160xi32>
    %23 = arith.ori %19, %22 : vector<8x160xi1>
    %24 = vector.extract_strided_slice %0 {offsets = [0, 5], sizes = [8, 1], strides = [1, 1]} : vector<8x10xi32> to vector<8x1xi32>
    %25 = vector.broadcast %24 : vector<8x1xi32> to vector<8x160xi32>
    %26 = arith.cmpi eq, %1, %25 : vector<8x160xi32>
    %27 = arith.ori %23, %26 : vector<8x160xi1>
    %28 = vector.extract_strided_slice %0 {offsets = [0, 6], sizes = [8, 1], strides = [1, 1]} : vector<8x10xi32> to vector<8x1xi32>
    %29 = vector.broadcast %28 : vector<8x1xi32> to vector<8x160xi32>
    %30 = arith.cmpi eq, %1, %29 : vector<8x160xi32>
    %31 = arith.ori %27, %30 : vector<8x160xi1>
    %32 = vector.extract_strided_slice %0 {offsets = [0, 7], sizes = [8, 1], strides = [1, 1]} : vector<8x10xi32> to vector<8x1xi32>
    %33 = vector.broadcast %32 : vector<8x1xi32> to vector<8x160xi32>
    %34 = arith.cmpi eq, %1, %33 : vector<8x160xi32>
    %35 = arith.ori %31, %34 : vector<8x160xi1>
    %36 = vector.extract_strided_slice %0 {offsets = [0, 8], sizes = [8, 1], strides = [1, 1]} : vector<8x10xi32> to vector<8x1xi32>
    %37 = vector.broadcast %36 : vector<8x1xi32> to vector<8x160xi32>
    %38 = arith.cmpi eq, %1, %37 : vector<8x160xi32>
    %39 = arith.ori %35, %38 : vector<8x160xi1>
    %40 = vector.extract_strided_slice %0 {offsets = [0, 9], sizes = [8, 1], strides = [1, 1]} : vector<8x10xi32> to vector<8x1xi32>
    %41 = vector.broadcast %40 : vector<8x1xi32> to vector<8x160xi32>
    %42 = arith.cmpi eq, %1, %41 : vector<8x160xi32>
    %43 = arith.ori %39, %42 : vector<8x160xi1>
    %44 = arith.extui %43 : vector<8x160xi1> to vector<8x160xi32>
    %45 = arith.sitofp %44 : vector<8x160xi32> to vector<8x160xf32>
    %c0_1 = arith.constant 0 : index
    %c0_2 = arith.constant 0 : index
    %46 = vector.load %arg2[%c0_1, %c0_2] : memref<160x64xf32, #tpu.memory_space<vmem>>, vector<160x64xf32>
    %cst = arith.constant dense<0.000000e+00> : vector<8x64xf32>
    %47 = tpu.matmul %45, %46, %cst {dimension_numbers = #tpu.dot_dimension_numbers<[1], [0], [0], [1], [0, 0, 1, 1], [], []>} : vector<8x160xf32>, vector<160x64xf32>, vector<8x64xf32> -> vector<8x64xf32>
    %c0_3 = arith.constant 0 : index
    %c0_4 = arith.constant 0 : index
    %48 = vector.load %arg3[%c0_3, %c0_4] : memref<1x64xf32, #tpu.memory_space<vmem>>, vector<1x64xf32>
    %49 = vector.broadcast %48 : vector<1x64xf32> to vector<8x64xf32>
    %50 = arith.addf %47, %49 : vector<8x64xf32>
    %cst_5 = arith.constant 0.000000e+00 : f32
    %51 = vector.broadcast %cst_5 : f32 to vector<8x64xf32>
    %52 = arith.maximumf %50, %51 : vector<8x64xf32>
    %c0_6 = arith.constant 0 : index
    %c0_7 = arith.constant 0 : index
    %53 = vector.load %arg4[%c0_6, %c0_7] : memref<64x256xf32, #tpu.memory_space<vmem>>, vector<64x256xf32>
    %cst_8 = arith.constant dense<0.000000e+00> : vector<8x256xf32>
    %54 = tpu.matmul %52, %53, %cst_8 {dimension_numbers = #tpu.dot_dimension_numbers<[1], [0], [0], [1], [0, 0, 1, 1], [], []>} : vector<8x64xf32>, vector<64x256xf32>, vector<8x256xf32> -> vector<8x256xf32>
    %c0_9 = arith.constant 0 : index
    %c0_10 = arith.constant 0 : index
    %55 = vector.load %arg5[%c0_9, %c0_10] : memref<1x256xf32, #tpu.memory_space<vmem>>, vector<1x256xf32>
    %56 = vector.broadcast %55 : vector<1x256xf32> to vector<8x256xf32>
    %57 = arith.addf %54, %56 : vector<8x256xf32>
    %c0_11 = arith.constant 0 : index
    %c0_12 = arith.constant 0 : index
    %58 = vector.load %arg6[%c0_11, %c0_12] : memref<8x256xf32, #tpu.memory_space<vmem>>, vector<8x256xf32>
    tpu.vector_store %arg6[%c0_11, %c0_12], %57 {strides = array<i32>} : memref<8x256xf32, #tpu.memory_space<vmem>>, vector<8x256xf32>,
    return
  }
  func.func @transform_0(%arg0: i32) -> (i32, i32) {
    %c0_i32 = arith.constant 0 : i32
    %c0_i32_0 = arith.constant 0 : i32
    return %arg0, %c0_i32 : i32, i32
  }
  func.func @transform_1(%arg0: i32) -> (i32, i32) {
    %c0_i32 = arith.constant 0 : i32
    %c0_i32_0 = arith.constant 0 : i32
    %c0_i32_1 = arith.constant 0 : i32
    return %c0_i32, %c0_i32_0 : i32, i32
  }
  func.func @transform_2(%arg0: i32) -> (i32, i32) {
    %c0_i32 = arith.constant 0 : i32
    %c0_i32_0 = arith.constant 0 : i32
    %c0_i32_1 = arith.constant 0 : i32
    return %c0_i32, %c0_i32_0 : i32, i32
  }
  func.func @transform_3(%arg0: i32) -> (i32, i32) {
    %c0_i32 = arith.constant 0 : i32
    %c0_i32_0 = arith.constant 0 : i32
    %c0_i32_1 = arith.constant 0 : i32
    return %c0_i32, %c0_i32_0 : i32, i32
  }
  func.func @transform_4(%arg0: i32) -> (i32, i32) {
    %c0_i32 = arith.constant 0 : i32
    %c0_i32_0 = arith.constant 0 : i32
    %c0_i32_1 = arith.constant 0 : i32
    return %c0_i32, %c0_i32_0 : i32, i32
  }
  func.func @transform_5(%arg0: i32) -> (i32, i32) {
    %c0_i32 = arith.constant 0 : i32
    %c0_i32_0 = arith.constant 0 : i32
    return %arg0, %c0_i32 : i32, i32
  }
}

</mosaic_0001>

<bundles_post_ra>
// kernel: wordle_guesser_forward.1
= control target key start
LH: loop header
LB: loop body
LE: loop exit
PB: predicated region body
PF: predicated region fallthrough
CT: control target
= control target key end

     0   :  { %v385_v0 = vmov 2   ;;  %v386_v1 = vmov 0   ;;  %v387_v7 = vmov 0.0|0.0   ;;  %v388_v10 = vmov 3   ;;  %s565_s0 = inlined_call_operand.vmem [shape: s32[8,10], index: 0, kind: input, shape index: {}]   ;;  %s566_s1 = inlined_call_operand.vmem [shape: f32[160,64], index: 1, kind: input, shape index: {}]   ;;  %s567_s3 = inlined_call_operand.vmem [shape: f32[64,256], index: 3, kind: input, shape index: {}]   ;;  %s568_s2 = inlined_call_operand.vmem [shape: f32[1,64], index: 2, kind: input, shape index: {}]   ;;  %s569_s4 = inlined_call_operand.vmem [shape: f32[1,256], index: 4, kind: input, shape index: {}]   ;;  %s570_s5 = inlined_call_operand.vmem [shape: f32[8,256], index: 5, kind: output, shape index: {}]  }
   0x1   :  { %376 = vset.pattern.permute.xlu1 %v385_v0  ;;  %374 = vset.pattern.permute.xlu0 %v386_v1  ;;  %v20_v2 = vld [vmem:[%s565_s0] sm:$0xff]  ;;  %v101_v4 = vld [vmem:[%s566_s1 + $0x8] sm:$0xff]  ;;  %v102_v5 = vld [vmem:[%s566_s1 + $0x10] sm:$0xff]  ;;  %v389_v11 = vmov 1   ;;  %v390_v15 = vmov 4   ;;  %v391_v16 = vmov 5   ;;  %v21_v61 = vlaneseq }
   0x2   :  { %v100_v3 = vld [vmem:[%s566_s1] sm:$0xff]  ;;  %41 = vperm.xlu1 %376, %v20_v2   ;;  %27 = vperm.xlu0 %374, %v20_v2   ;;  %v103_v6 = vld [vmem:[%s566_s1 + $0x18] sm:$0xff]  ;;  %v105_v13 = vld [vmem:[%s566_s1 + $0x28] sm:$0xff]  ;;  %v392_v22 = vmov 6   ;;  %v393_v23 = vmov 8   ;;  %v394_v27 = vmov 7  }
   0x3   :  { %316 = vmatprep.subr.bf16.mxu0 %v387_v7  ;;  %v317_v8 = vpack.c.bf16 %v101_v4, %v100_v3  ;;  %v320_v9 = vpack.c.bf16 %v103_v6, %v102_v5  ;;  %v104_v12 = vld [vmem:[%s566_s1 + $0x20] sm:$0xff]  ;;  %v106_v17 = vld [vmem:[%s566_s1 + $0x30] sm:$0xff]  ;;  %v107_v18 = vld [vmem:[%s566_s1 + $0x38] sm:$0xff]  ;;  %v395_v28 = vmov 9   ;;  %v396_v36 = vmov 0.0  }
   0x4   :  { %v323_v14 = vpack.c.bf16 %v105_v13, %v104_v12  ;;  %v326_v19 = vpack.c.bf16 %v107_v18, %v106_v17  ;;  %v108_v20 = vld [vmem:[%s566_s1 + $0x40] sm:$0xff]  ;;  %v109_v21 = vld [vmem:[%s566_s1 + $0x48] sm:$0xff]  ;;  %v110_v25 = vld [vmem:[%s566_s1 + $0x50] sm:$0xff]  ;;  %298 = vmatprep.mubr.f32.mxu1 %v396_v36  ;;  %v22_v62 = vand.u32 127, %v21_v61 }
   0x5   :  { %318 = vmatpush1.bf16.msra.mxu0 %v317_v8  ;;  %v329_v24 = vpack.c.bf16 %v109_v21, %v108_v20  ;;  %v111_v26 = vld [vmem:[%s566_s1 + $0x58] sm:$0xff]  ;;  %v112_v30 = vld [vmem:[%s566_s1 + $0x60] sm:$0xff]  ;;  %v113_v31 = vld [vmem:[%s566_s1 + $0x68] sm:$0xff] }
   0x6   :  { %377 = vset.pattern.permute.xlu1 %v388_v10  ;;  %375 = vset.pattern.permute.xlu0 %v389_v11  ;;  %v332_v29 = vpack.c.bf16 %v111_v26, %v110_v25  ;;  %v335_v32 = vpack.c.bf16 %v113_v31, %v112_v30  ;;  %v114_v33 = vld [vmem:[%s566_s1 + $0x70] sm:$0xff]  ;;  %v115_v34 = vld [vmem:[%s566_s1 + $0x78] sm:$0xff]  ;;  %v116_v37 = vld [vmem:[%s566_s1 + $0x80] sm:$0xff]  ;;  %v23_v1 = vadd.s32 128, %v22_v62 }
   0x7   :  { %48 = vperm.xlu1 %377, %v20_v2   ;;  %34 = vperm.xlu0 %375, %v20_v2   ;;  %v338_v35 = vpack.c.bf16 %v115_v34, %v114_v33  ;;  %v117_v38 = vld [vmem:[%s566_s1 + $0x88] sm:$0xff]  ;;  %v118_v39 = vld [vmem:[%s566_s1 + $0x90] sm:$0xff]  ;;  %v119_v40 = vld [vmem:[%s566_s1 + $0x98] sm:$0xff] }
   0x8   :  { %319 = vmatprep.subr.bf16.mxu0 %v387_v7  ;;  %v203_v41 = vld [vmem:[%s567_s3 + $0x8] sm:$0xff]  ;;  %v205_v42 = vld [vmem:[%s567_s3 + $0x18] sm:$0xff]  ;;  %v202_v43 = vld [vmem:[%s567_s3] sm:$0xff]  ;;  %v341_v44 = vpack.c.bf16 %v117_v38, %v116_v37  ;;  %v344_v56 = vpack.c.bf16 %v119_v40, %v118_v39 }
   0x9   :  { %321 = vmatpush1.bf16.msra.mxu0 %v320_v9  ;;  %v346_v45 = vpack.c.bf16 %v205_v42, %v203_v41  ;;  %v204_v46 = vld [vmem:[%s567_s3 + $0x10] sm:$0xff]  ;;  %v207_v47 = vld [vmem:[%s567_s3 + $0x28] sm:$0xff]  ;;  %v209_v48 = vld [vmem:[%s567_s3 + $0x38] sm:$0xff] }
   0xa   :  { %322 = vmatprep.subr.bf16.mxu0 %v387_v7  ;;  %v348_v49 = vpack.c.bf16 %v204_v46, %v202_v43  ;;  %v350_v50 = vpack.c.bf16 %v209_v48, %v207_v47  ;;  %v206_v51 = vld [vmem:[%s567_s3 + $0x20] sm:$0xff]  ;;  %v208_v52 = vld [vmem:[%s567_s3 + $0x30] sm:$0xff]  ;;  %v211_v53 = vld [vmem:[%s567_s3 + $0x48] sm:$0xff] }
   0xb   :  { %378 = vset.pattern.permute.xlu1 %v390_v15  ;;  %379 = vset.pattern.permute.xlu0 %v391_v16  ;;  %v213_v54 = vld [vmem:[%s567_s3 + $0x58] sm:$0xff]  ;;  %v352_v55 = vpack.c.bf16 %v208_v52, %v206_v51  ;;  %v210_v58 = vld [vmem:[%s567_s3 + $0x40] sm:$0xff]  ;;  %v212_v59 = vld [vmem:[%s567_s3 + $0x50] sm:$0xff] }
   0xc   :  { %55 = vperm.xlu1 %378, %v20_v2   ;;  %62 = vperm.xlu0 %379, %v20_v2   ;;  %v354_v57 = vpack.c.bf16 %v213_v54, %v211_v53  ;;  %v356_v60 = vpack.c.bf16 %v212_v59, %v210_v58  ;;  %v215_v12 = vld [vmem:[%s567_s3 + $0x68] sm:$0xff]  ;;  %v217_v13 = vld [vmem:[%s567_s3 + $0x78] sm:$0xff]  ;;  %v214_v15 = vld [vmem:[%s567_s3 + $0x60] sm:$0xff] }
   0xd   :  { %324 = vmatpush1.bf16.msra.mxu0 %v323_v14  ;;  %347 = vmatprep.subr.bf16.mxu1 %v346_v45  ;;  %v358_v14 = vpack.c.bf16 %v217_v13, %v215_v12  ;;  %v216_v16 = vld [vmem:[%s567_s3 + $0x70] sm:$0xff]  ;;  %v313_v18 = vld [vmem:[%s568_s2] ss:$0 sm:$0xff] }
   0xe   :  { %325 = vmatprep.subr.bf16.mxu0 %v387_v7  ;;  %349 = vmatpush1.bf16.msra.mxu1 %v348_v49  ;;  %v360_v17 = vpack.c.bf16 %v216_v16, %v214_v15  ;;  %v218_v25 = vld [vmem:[%s569_s4] sm:$0x3] }
   0xf   :  { %351 = vmatprep.subr.bf16.mxu1 %v350_v50 }
  0x10   :  { %380 = vset.pattern.permute.xlu1 %v392_v22  ;;  %382 = vset.pattern.permute.xlu0 %v393_v23  ;;  %v221_v23 = vshrl.u32 %v21_v61, 7 }
  0x11   :  { %69 = vperm.xlu1 %380, %v20_v2   ;;  %83 = vperm.xlu0 %382, %v20_v2  }
  0x12   :  { %327 = vmatpush1.bf16.msra.mxu0 %v326_v19  ;;  %353 = vmatpush1.bf16.msra.mxu1 %v352_v55  ;;  %v226_v26 = vsub.s32 1, %v221_v23 }
  0x13   :  { %328 = vmatprep.subr.bf16.mxu0 %v387_v7  ;;  %355 = vmatprep.subr.bf16.mxu1 %v354_v57 }
  0x15   :  { %381 = vset.pattern.permute.xlu1 %v394_v27  ;;  %384 = vset.pattern.permute.xlu0 %v395_v28 }
  0x16   :  { %76 = vperm.xlu1 %381, %v20_v2   ;;  %330 = vmatpush1.bf16.msra.mxu0 %v329_v24  ;;  %v222_v24 = vsub.s32 0, %v221_v23 }
  0x17   :  { %331 = vmatprep.subr.bf16.mxu0 %v387_v7  ;;  %357 = vmatpush1.bf16.msra.mxu1 %v356_v60 }
  0x18   :  { %359 = vmatprep.subr.bf16.mxu1 %v358_v14  ;;  %v223_v27 = vrot.slane %v218_v25, %v222_v24 }
  0x1a   :  { %383 = vset.pattern.permute.xlu1 %v395_v28  ;;  %333 = vmatpush1.bf16.msra.mxu0 %v332_v29  ;;  %v227_v28 = vrot.slane %v218_v25, %v226_v26 }
  0x1b   :  { %90 = vperm.xlu1 %383, %v20_v2   ;;  %334 = vmatprep.subr.bf16.mxu0 %v387_v7 }
  0x1c   :  { %361 = vmatpush1.bf16.msra.mxu1 %v360_v17 }
  0x1e   :  { %336 = vmatpush1.bf16.msra.mxu0 %v335_v32 }
  0x1f   :  { %337 = vmatprep.subr.bf16.mxu0 %v387_v7 }
  0x22   :  { %339 = vmatpush1.bf16.msra.mxu0 %v338_v35 }
  0x23   :  { %340 = vmatprep.subr.bf16.mxu0 %v387_v7 }
  0x26   :  { %342 = vmatpush1.bf16.msra.mxu0 %v341_v44 }
  0x27   :  { %343 = vmatprep.subr.bf16.mxu0 %v387_v7 }
  0x2a   :  { %345 = vmatpush1.bf16.msra.mxu0 %v344_v56 }
  0x81   :  { %v42_v63 = vpop.permute.xlu1 %41  ;;  %v28_v0 = vpop.permute.xlu0 %27 }
  0x82   :  { %vm29_vm0 = vcmp.eq.s32.totalorder %v22_v62, %v28_v0  ;;  %vm30_vm1 = vcmp.eq.s32.totalorder %v23_v1, %v28_v0  ;;  %vm43_vm6 = vcmp.eq.s32.totalorder %v22_v62, %v42_v63  ;;  %vm44_vm7 = vcmp.eq.s32.totalorder %v23_v1, %v42_v63 }
  0x86   :  { %v49_v2 = vpop.permute.xlu1 %48  ;;  %v35_v3 = vpop.permute.xlu0 %34 }
  0x87   :  { %vm36_vm2 = vcmp.eq.s32.totalorder %v22_v62, %v35_v3  ;;  %vm37_vm3 = vcmp.eq.s32.totalorder %v23_v1, %v35_v3  ;;  %vm50_vm10 = vcmp.eq.s32.totalorder %v22_v62, %v49_v2  ;;  %vm51_vm12 = vcmp.eq.s32.totalorder %v23_v1, %v49_v2 }
  0x88   :  { %vm38_vm4 = vmor %vm29_vm0, %vm36_vm2 }
  0x89   :  { %vm39_vm5 = vmor %vm30_vm1, %vm37_vm3 }
  0x8a   :  { %vm45_vm8 = vmor %vm38_vm4, %vm43_vm6 }
  0x8b   :  { %v56_v4 = vpop.permute.xlu1 %55  ;;  %vm46_vm9 = vmor %vm39_vm5, %vm44_vm7  ;;  %v63_v5 = vpop.permute.xlu0 %62 }
  0x8c   :  { %vm57_vm11 = vcmp.eq.s32.totalorder %v22_v62, %v56_v4  ;;  %vm52_vm13 = vmor %vm45_vm8, %vm50_vm10  ;;  %vm58_vm14 = vcmp.eq.s32.totalorder %v23_v1, %v56_v4  ;;  %vm64_vm2 = vcmp.eq.s32.totalorder %v22_v62, %v63_v5  ;;  %vm65_vm3 = vcmp.eq.s32.totalorder %v23_v1, %v63_v5 }
  0x8d   :  { %vm53_vm15 = vmor %vm46_vm9, %vm51_vm12 }
  0x8e   :  { %vm59_vm0 = vmor %vm52_vm13, %vm57_vm11 }
  0x8f   :  { %vm60_vm1 = vmor %vm53_vm15, %vm58_vm14 }
  0x90   :  { %v70_v6 = vpop.permute.xlu1 %69  ;;  %vm66_vm6 = vmor %vm59_vm0, %vm64_vm2  ;;  %v84_v7 = vpop.permute.xlu0 %83 }
  0x91   :  { %vm71_vm4 = vcmp.eq.s32.totalorder %v22_v62, %v70_v6  ;;  %vm72_vm5 = vcmp.eq.s32.totalorder %v23_v1, %v70_v6  ;;  %vm67_vm7 = vmor %vm60_vm1, %vm65_vm3  ;;  %vm85_vm13 = vcmp.eq.s32.totalorder %v22_v62, %v84_v7  ;;  %vm86_vm15 = vcmp.eq.s32.totalorder %v23_v1, %v84_v7 }
  0x92   :  { %vm73_vm8 = vmor %vm66_vm6, %vm71_vm4  ;;  %vm127_vm6 = vcmask 261120  }
  0x93   :  { %vm74_vm10 = vmor %vm67_vm7, %vm72_vm5  ;;  %vm230_vm7 = vcmask 523264  }
  0x95   :  { %v77_v8 = vpop.permute.xlu1 %76 }
  0x96   :  { %vm78_vm9 = vcmp.eq.s32.totalorder %v22_v62, %v77_v8  ;;  %vm79_vm12 = vcmp.eq.s32.totalorder %v23_v1, %v77_v8 }
  0x97   :  { %vm80_vm11 = vmor %vm73_vm8, %vm78_vm9 }
  0x98   :  { %vm81_vm14 = vmor %vm74_vm10, %vm79_vm12 }
  0x99   :  { %vm87_vm0 = vmor %vm80_vm11, %vm85_vm13 }
  0x9a   :  { %v91_v9 = vpop.permute.xlu1 %90  ;;  %vm88_vm2 = vmor %vm81_vm14, %vm86_vm15 }
  0x9b   :  { %vm92_vm1 = vcmp.eq.s32.totalorder %v22_v62, %v91_v9  ;;  %vm93_vm3 = vcmp.eq.s32.totalorder %v23_v1, %v91_v9 }
  0x9c   :  { %vm94_vm4 = vmor %vm87_vm0, %vm92_vm1 }
  0x9d   :  { %vm95_vm5 = vmor %vm88_vm2, %vm93_vm3  ;;  %v311_v10 = vsel %vm94_vm4, 1.0, %v396_v36 }
  0x9e   :  { %v312_v11 = vsel %vm95_vm5, 1.0, %v396_v36 }
  0x9f   :  { %314 = vmatprep.mubr.msk.f32.mxu0 %vm127_vm6, %v312_v11 }
  0xa0   :  { %196 = vmatmul.mubr.f32.vlgmr.msra.gmra.mrb[0].mxu0 %v311_v10 }
 0x173   :  { %v197_v19 = vpop.f32.mrb[0].mxu0 }
 0x174   :  { %v198_v20 = vadd.f32 %v313_v18, %v197_v19  ;;  %v199_v21 = vpop.f32.mrb[1].mxu0 }
 0x176   :  { %v201_v22 = vmax.f32 %v198_v20, 0.0 }
 0x178   :  { %315 = vmatmul.mubr.msk.f32.vlgmr.msra.gmra.mrb[0].mxu1 %vm230_vm7, %v201_v22 }
 0x24b   :  { %v300_v29 = vpop.f32.mrb[0].mxu1 }
 0x24c   :  { %v301_v30 = vadd.f32 %v300_v29, %v223_v27  ;;  %v302_v31 = vpop.f32.mrb[1].mxu1 }
 0x24d   :  { %v303_v32 = vadd.f32 %v302_v31, %v227_v28 }
 0x24e   :  { %305 = vst [vmem:[%s570_s5] sm:$0xff] %v301_v30 }
 0x24f   :  { %306 = vst [vmem:[%s570_s5 + $0x8] sm:$0xff] %v303_v32 }

</bundles_post_ra>
